<compile_context>
chip_gen: v7x
topology: tpu7x:2x2x1
jax: 0.10.0
libtpu: 0.0.40
codegen_flags: <defaults>
</compile_context>

<pallas_src>
import math
import functools

import jax
import jax.numpy as jnp
from jax.experimental import pallas as pl
from jax.experimental.pallas import tpu as pltpu  # noqa: F401


def _round_up(x, m):
    return ((x + m - 1) // m) * m


# -----------------------------------------------------------------------------
# Fused Pallas kernel (all layers + both directions + final FC)
# -----------------------------------------------------------------------------
def _make_fused_rnn_kernel(*, T, Bp, D, H, O, num_layers, ndirs):
    GH = ndirs * H
    din_max = _round_up(max(D, GH), 8)
    wih_stride = din_max + 8          # + one 8-row pad block whose first row is the bias

    def kernel(x_ref, wih_ref, whh_ref, fc_ref, out_ref):
        # Lane masks for fwd/rev mixing (hoisted; pure VPU selects inside the loop).
        if ndirs == 2:
            fwd_mask_step = jax.lax.broadcasted_iota(jnp.int32, (Bp, GH), 1) < H
            if num_layers > 1:
                fwd_mask_seq = jax.lax.broadcasted_iota(
                    jnp.int32, (T * Bp, GH), 1) < H

        layer_in = x_ref[...]                      # (T*Bp, D) time-major slab
        last = None
        for l in range(num_layers):
            din = D if l == 0 else GH
            base = l * wih_stride
            wih_l = wih_ref[base:base + din, :]                       # (din, GH)
            bias_l = wih_ref[base + din_max:base + din_max + 1, :]    # (1, GH)
            whh_l = whh_ref[l * GH:(l + 1) * GH, :]                   # (GH, GH) blk-diag

            # 1) Hoisted input projection: one batched MXU matmul per layer,
            #    producing both directions' projections (off the serial path).
            proj = jnp.dot(layer_in, wih_l,
                           preferred_element_type=jnp.float32) + bias_l  # (T*Bp, GH)

            # 2) Recurrence: fwd+rev fused into a single dot per step via the
            #    block-diagonal W_hh; carry is the lane-concat [h_fwd | h_rev].
            h = jnp.zeros((Bp, GH), jnp.float32)
            steps = []
            for i in range(T):
                rf = i * Bp
                if ndirs == 2:
                    rr = (T - 1 - i) * Bp
                    x_step = jnp.where(fwd_mask_step,
                                       proj[rf:rf + Bp, :],   # fwd dir, time i
                                       proj[rr:rr + Bp, :])   # rev dir, time T-1-i
                else:
                    x_step = proj[rf:rf + Bp, :]
                h = jnp.tanh(x_step + jnp.dot(
                    h, whh_l, preferred_element_type=jnp.float32))
                steps.append(h)        # [h_fwd(t=i) | h_rev(t=T-1-i)]

            if l == num_layers - 1:
                # 3) Final Linear only needs out[:, -1, :] = [fwd(T-1) | rev(T-1)].
                if ndirs == 2:
                    last = jnp.where(fwd_mask_step, steps[T - 1], steps[0])
                else:
                    last = steps[T - 1]
            else:
                # Re-time-order the reverse half with a lane select; the sequence
                # never leaves vregs (no VMEM scratch, no masked stores).
                seq_iter = jnp.concatenate(steps, axis=0)             # (T*Bp, GH)
                if ndirs == 2:
                    seq_flip = jnp.concatenate(steps[::-1], axis=0)
                    layer_in = jnp.where(fwd_mask_seq, seq_iter, seq_flip)
                else:
                    layer_in = seq_iter

        wfc = fc_ref[0:GH, :]                      # (GH, O)
        bfc = fc_ref[GH:GH + 1, :]                 # (1, O)
        out_ref[...] = (jnp.dot(last, wfc, preferred_element_type=jnp.float32)
                        + bfc).astype(out_ref.dtype)

    return kernel


# -----------------------------------------------------------------------------
# Wrapper
# -----------------------------------------------------------------------------
def rnn_model_forward(x_btd, params, *, num_layers, bidirectional):
    """Matches RNNModel.forward: h0 = zeros, out = fc(rnn(x)[:, -1, :])."""
    x = jnp.asarray(x_btd, jnp.float32)
    B, T, D = x.shape
    ndirs = 2 if bidirectional else 1
    H = params["rnn"][0][0][1].shape[0]            # w_hh is (H, H)
    GH = ndirs * H
    w_fc, b_fc = params["fc"]
    O = w_fc.shape[0]

    Bp = _round_up(max(B, 8), 8)                   # pad batch to one sublane tile
    din_max = _round_up(max(D, GH), 8)
    wih_stride = din_max + 8

    # --- layout plumbing / packing only (outside the kernel) ------------------
    if Bp != B:
        x = jnp.concatenate([x, jnp.zeros((Bp - B, T, D), jnp.float32)], axis=0)
    x2 = jnp.transpose(x, (1, 0, 2)).reshape(T * Bp, D)   # time-major (T*Bp, D) slab

    # Slab 1: transposed w_ih for all layers/directions, plus combined b_ih+b_hh
    # stored as one extra row per layer block.
    wih_slab = jnp.zeros((num_layers * wih_stride, GH), jnp.float32)
    # Slab 2: per-layer block-diagonal transposed w_hh.
    whh_slab = jnp.zeros((num_layers * GH, GH), jnp.float32)
    for l in range(num_layers):
        din = D if l == 0 else GH
        base = l * wih_stride
        for d in range(ndirs):
            w_ih, w_hh, b_ih, b_hh = params["rnn"][l][d]
            wih_slab = wih_slab.at[base:base + din, d * H:(d + 1) * H].set(
                jnp.asarray(w_ih, jnp.float32).T)
            wih_slab = wih_slab.at[base + din_max, d * H:(d + 1) * H].set(
                jnp.asarray(b_ih, jnp.float32) + jnp.asarray(b_hh, jnp.float32))
            whh_slab = whh_slab.at[l * GH + d * H:l * GH + (d + 1) * H,
                                   d * H:(d + 1) * H].set(
                jnp.asarray(w_hh, jnp.float32).T)

    # Slab 3: transposed w_fc with the fc bias appended as one extra row.
    fc_slab = jnp.concatenate(
        [jnp.asarray(w_fc, jnp.float32).T,
         jnp.asarray(b_fc, jnp.float32).reshape(1, O)], axis=0)      # (GH+1, O)

    kernel = _make_fused_rnn_kernel(T=T, Bp=Bp, D=D, H=H, O=O,
                                    num_layers=num_layers, ndirs=ndirs)

    out_p = pl.pallas_call(
        kernel,
        out_shape=jax.ShapeDtypeStruct((Bp, O), jnp.float32),
    )(x2, wih_slab, whh_slab, fc_slab)
    return out_p[:B]
    # NOTE: inter-layer dropout is train-time only (and p=0.0 here), so it is a no-op.


# -----------------------------------------------------------------------------
# Pure-JAX reference (for correctness checking)
# -----------------------------------------------------------------------------
def _rnn_dir_ref(x_tbd, w_ih, w_hh, bias, reverse):
    def step(h, x_t):
        h_new = jnp.tanh(x_t @ w_ih.T + h @ w_hh.T + bias)
        return h_new, h_new

    xs = x_tbd[::-1] if reverse else x_tbd
    h0 = jnp.zeros((x_tbd.shape[1], w_hh.shape[0]), jnp.float32)
    _, ys = jax.lax.scan(step, h0, xs)
    return ys[::-1] if reverse else ys


def rnn_model_forward_ref(x_btd, params, *, num_layers, bidirectional):
    layer_in = jnp.transpose(jnp.asarray(x_btd, jnp.float32), (1, 0, 2))
    dirs = [False, True] if bidirectional else [False]
    for layer in range(num_layers):
        outs = []
        for d, rev in enumerate(dirs):
            w_ih, w_hh, b_ih, b_hh = params["rnn"][layer][d]
            outs.append(_rnn_dir_ref(layer_in, w_ih, w_hh, b_ih + b_hh, rev))
        layer_in = outs[0] if len(outs) == 1 else jnp.concatenate(outs, axis=-1)
    last = layer_in[-1]
    w_fc, b_fc = params["fc"]
    return last @ w_fc.T + b_fc


# -----------------------------------------------------------------------------
# Deterministic parameter init (mirrors PyTorch shapes / uniform(-1/sqrt(H)))
# -----------------------------------------------------------------------------
def init_params(key, *, input_dim, hidden_dim, num_layers, output_dim, bidirectional):
    num_dirs = 2 if bidirectional else 1
    stdv = 1.0 / math.sqrt(hidden_dim)

    rnn_params = []
    for layer in range(num_layers):
        in_dim = input_dim if layer == 0 else hidden_dim * num_dirs
        dir_params = []
        for _ in range(num_dirs):
            key, k1, k2, k3, k4 = jax.random.split(key, 5)
            w_ih = jax.random.uniform(k1, (hidden_dim, in_dim), jnp.float32, -stdv, stdv)
            w_hh = jax.random.uniform(k2, (hidden_dim, hidden_dim), jnp.float32, -stdv, stdv)
            b_ih = jax.random.uniform(k3, (hidden_dim,), jnp.float32, -stdv, stdv)
            b_hh = jax.random.uniform(k4, (hidden_dim,), jnp.float32, -stdv, stdv)
            dir_params.append((w_ih, w_hh, b_ih, b_hh))
        rnn_params.append(dir_params)

    fc_in = hidden_dim * num_dirs
    fc_std = 1.0 / math.sqrt(fc_in)
    key, k1, k2 = jax.random.split(key, 3)
    w_fc = jax.random.uniform(k1, (output_dim, fc_in), jnp.float32, -fc_std, fc_std)
    b_fc = jax.random.uniform(k2, (output_dim,), jnp.float32, -fc_std, fc_std)

    return {"rnn": rnn_params, "fc": (w_fc, b_fc)}


# -----------------------------------------------------------------------------
# Main
# -----------------------------------------------------------------------------
if __name__ == "__main__":
    # Hyperparameters (matching RNNModel(__init__) signature)
    input_dim = 16
    hidden_dim = 32
    num_layers = 2
    output_dim = 4
    dropout = 0.0          # num_layers > 1, but p=0.0 -> dropout is a no-op
    bidirectional = True

    batch = 2
    seq_len = 8

    key = jax.random.PRNGKey(0)
    key, pkey, xkey = jax.random.split(key, 3)

    params = init_params(
        pkey,
        input_dim=input_dim,
        hidden_dim=hidden_dim,
        num_layers=num_layers,
        output_dim=output_dim,
        bidirectional=bidirectional,
    )

    # x: (batch, seq, input_dim) — batch_first, as in the PyTorch module
    x = jax.random.normal(xkey, (batch, seq_len, input_dim), jnp.float32)

    fwd = jax.jit(functools.partial(
        rnn_model_forward, num_layers=num_layers, bidirectional=bidirectional))
    out = jax.block_until_ready(fwd(x, params))

    # Sanity-check against a pure-JAX lax.scan reference
    ref = jax.block_until_ready(
        rnn_model_forward_ref(
            x, params, num_layers=num_layers, bidirectional=bidirectional
        )
    )
    assert out.shape == (batch, output_dim), out.shape
    assert jnp.allclose(out, ref, atol=1e-4, rtol=1e-4), (
        "Pallas RNN output mismatch vs reference", out, ref
    )

    print("KERNEL_OK")
</pallas_src>

<mosaic_0001>
module attributes {stable_mosaic.version = 11 : i64} {
  func.func @kernel(%arg0: memref<64x16xf32, #tpu.memory_space<vmem>>, %arg1: memref<144x64xf32, #tpu.memory_space<vmem>>, %arg2: memref<128x64xf32, #tpu.memory_space<vmem>>, %arg3: memref<65x4xf32, #tpu.memory_space<vmem>>, %arg4: memref<8x4xf32, #tpu.memory_space<vmem>>) attributes {dimension_semantics = [], scalar_prefetch = 0 : i64, scratch_operands = 0 : i64, tpu.core_type = #tpu.core_type<tc>} {
    %0 = tpu.iota {dimensions = array<i32: 1>} : vector<8x64xi32>
    %c32_i32 = arith.constant 32 : i32
    %1 = vector.broadcast %c32_i32 : i32 to vector<8x64xi32>
    %2 = arith.cmpi slt, %0, %1 : vector<8x64xi32>
    %3 = tpu.iota {dimensions = array<i32: 1>} : vector<64x64xi32>
    %c32_i32_0 = arith.constant 32 : i32
    %4 = vector.broadcast %c32_i32_0 : i32 to vector<64x64xi32>
    %5 = arith.cmpi slt, %3, %4 : vector<64x64xi32>
    %c0 = arith.constant 0 : index
    %c0_1 = arith.constant 0 : index
    %6 = vector.load %arg0[%c0, %c0_1] : memref<64x16xf32, #tpu.memory_space<vmem>>, vector<64x16xf32>
    %c0_2 = arith.constant 0 : index
    %c0_3 = arith.constant 0 : index
    %7 = vector.load %arg1[%c0_2, %c0_3] : memref<144x64xf32, #tpu.memory_space<vmem>>, vector<16x64xf32>
    %c64 = arith.constant 64 : index
    %c0_4 = arith.constant 0 : index
    %8 = vector.load %arg1[%c64, %c0_4] : memref<144x64xf32, #tpu.memory_space<vmem>>, vector<1x64xf32>
    %c0_5 = arith.constant 0 : index
    %c0_6 = arith.constant 0 : index
    %9 = vector.load %arg2[%c0_5, %c0_6] : memref<128x64xf32, #tpu.memory_space<vmem>>, vector<64x64xf32>
    %cst = arith.constant dense<0.000000e+00> : vector<64x64xf32>
    %10 = tpu.matmul %6, %7, %cst {dimension_numbers = #tpu.dot_dimension_numbers<[1], [0], [0], [1], [0, 0, 1, 1], [], []>} : vector<64x16xf32>, vector<16x64xf32>, vector<64x64xf32> -> vector<64x64xf32>
    %11 = vector.broadcast %8 : vector<1x64xf32> to vector<64x64xf32>
    %12 = arith.addf %10, %11 : vector<64x64xf32>
    %cst_7 = arith.constant 0.000000e+00 : f32
    %13 = vector.broadcast %cst_7 : f32 to vector<8x64xf32>
    %14 = vector.extract_strided_slice %12 {offsets = [0, 0], sizes = [8, 64], strides = [1, 1]} : vector<64x64xf32> to vector<8x64xf32>
    %15 = vector.extract_strided_slice %12 {offsets = [56, 0], sizes = [8, 64], strides = [1, 1]} : vector<64x64xf32> to vector<8x64xf32>
    %16 = arith.select %2, %14, %15 : vector<8x64xi1>, vector<8x64xf32>
    %cst_8 = arith.constant dense<0.000000e+00> : vector<8x64xf32>
    %17 = tpu.matmul %13, %9, %cst_8 {dimension_numbers = #tpu.dot_dimension_numbers<[1], [0], [0], [1], [0, 0, 1, 1], [], []>} : vector<8x64xf32>, vector<64x64xf32>, vector<8x64xf32> -> vector<8x64xf32>
    %18 = arith.addf %16, %17 : vector<8x64xf32>
    %19 = math.tanh %18 : vector<8x64xf32>
    %20 = vector.extract_strided_slice %12 {offsets = [8, 0], sizes = [8, 64], strides = [1, 1]} : vector<64x64xf32> to vector<8x64xf32>
    %21 = vector.extract_strided_slice %12 {offsets = [48, 0], sizes = [8, 64], strides = [1, 1]} : vector<64x64xf32> to vector<8x64xf32>
    %22 = arith.select %2, %20, %21 : vector<8x64xi1>, vector<8x64xf32>
    %cst_9 = arith.constant dense<0.000000e+00> : vector<8x64xf32>
    %23 = tpu.matmul %19, %9, %cst_9 {dimension_numbers = #tpu.dot_dimension_numbers<[1], [0], [0], [1], [0, 0, 1, 1], [], []>} : vector<8x64xf32>, vector<64x64xf32>, vector<8x64xf32> -> vector<8x64xf32>
    %24 = arith.addf %22, %23 : vector<8x64xf32>
    %25 = math.tanh %24 : vector<8x64xf32>
    %26 = vector.extract_strided_slice %12 {offsets = [16, 0], sizes = [8, 64], strides = [1, 1]} : vector<64x64xf32> to vector<8x64xf32>
    %27 = vector.extract_strided_slice %12 {offsets = [40, 0], sizes = [8, 64], strides = [1, 1]} : vector<64x64xf32> to vector<8x64xf32>
    %28 = arith.select %2, %26, %27 : vector<8x64xi1>, vector<8x64xf32>
    %cst_10 = arith.constant dense<0.000000e+00> : vector<8x64xf32>
    %29 = tpu.matmul %25, %9, %cst_10 {dimension_numbers = #tpu.dot_dimension_numbers<[1], [0], [0], [1], [0, 0, 1, 1], [], []>} : vector<8x64xf32>, vector<64x64xf32>, vector<8x64xf32> -> vector<8x64xf32>
    %30 = arith.addf %28, %29 : vector<8x64xf32>
    %31 = math.tanh %30 : vector<8x64xf32>
    %32 = vector.extract_strided_slice %12 {offsets = [24, 0], sizes = [8, 64], strides = [1, 1]} : vector<64x64xf32> to vector<8x64xf32>
    %33 = vector.extract_strided_slice %12 {offsets = [32, 0], sizes = [8, 64], strides = [1, 1]} : vector<64x64xf32> to vector<8x64xf32>
    %34 = arith.select %2, %32, %33 : vector<8x64xi1>, vector<8x64xf32>
    %cst_11 = arith.constant dense<0.000000e+00> : vector<8x64xf32>
    %35 = tpu.matmul %31, %9, %cst_11 {dimension_numbers = #tpu.dot_dimension_numbers<[1], [0], [0], [1], [0, 0, 1, 1], [], []>} : vector<8x64xf32>, vector<64x64xf32>, vector<8x64xf32> -> vector<8x64xf32>
    %36 = arith.addf %34, %35 : vector<8x64xf32>
    %37 = math.tanh %36 : vector<8x64xf32>
    %38 = vector.extract_strided_slice %12 {offsets = [32, 0], sizes = [8, 64], strides = [1, 1]} : vector<64x64xf32> to vector<8x64xf32>
    %39 = vector.extract_strided_slice %12 {offsets = [24, 0], sizes = [8, 64], strides = [1, 1]} : vector<64x64xf32> to vector<8x64xf32>
    %40 = arith.select %2, %38, %39 : vector<8x64xi1>, vector<8x64xf32>
    %cst_12 = arith.constant dense<0.000000e+00> : vector<8x64xf32>
    %41 = tpu.matmul %37, %9, %cst_12 {dimension_numbers = #tpu.dot_dimension_numbers<[1], [0], [0], [1], [0, 0, 1, 1], [], []>} : vector<8x64xf32>, vector<64x64xf32>, vector<8x64xf32> -> vector<8x64xf32>
    %42 = arith.addf %40, %41 : vector<8x64xf32>
    %43 = math.tanh %42 : vector<8x64xf32>
    %44 = vector.extract_strided_slice %12 {offsets = [40, 0], sizes = [8, 64], strides = [1, 1]} : vector<64x64xf32> to vector<8x64xf32>
    %45 = vector.extract_strided_slice %12 {offsets = [16, 0], sizes = [8, 64], strides = [1, 1]} : vector<64x64xf32> to vector<8x64xf32>
    %46 = arith.select %2, %44, %45 : vector<8x64xi1>, vector<8x64xf32>
    %cst_13 = arith.constant dense<0.000000e+00> : vector<8x64xf32>
    %47 = tpu.matmul %43, %9, %cst_13 {dimension_numbers = #tpu.dot_dimension_numbers<[1], [0], [0], [1], [0, 0, 1, 1], [], []>} : vector<8x64xf32>, vector<64x64xf32>, vector<8x64xf32> -> vector<8x64xf32>
    %48 = arith.addf %46, %47 : vector<8x64xf32>
    %49 = math.tanh %48 : vector<8x64xf32>
    %50 = vector.extract_strided_slice %12 {offsets = [48, 0], sizes = [8, 64], strides = [1, 1]} : vector<64x64xf32> to vector<8x64xf32>
    %51 = vector.extract_strided_slice %12 {offsets = [8, 0], sizes = [8, 64], strides = [1, 1]} : vector<64x64xf32> to vector<8x64xf32>
    %52 = arith.select %2, %50, %51 : vector<8x64xi1>, vector<8x64xf32>
    %cst_14 = arith.constant dense<0.000000e+00> : vector<8x64xf32>
    %53 = tpu.matmul %49, %9, %cst_14 {dimension_numbers = #tpu.dot_dimension_numbers<[1], [0], [0], [1], [0, 0, 1, 1], [], []>} : vector<8x64xf32>, vector<64x64xf32>, vector<8x64xf32> -> vector<8x64xf32>
    %54 = arith.addf %52, %53 : vector<8x64xf32>
    %55 = math.tanh %54 : vector<8x64xf32>
    %56 = vector.extract_strided_slice %12 {offsets = [56, 0], sizes = [8, 64], strides = [1, 1]} : vector<64x64xf32> to vector<8x64xf32>
    %57 = vector.extract_strided_slice %12 {offsets = [0, 0], sizes = [8, 64], strides = [1, 1]} : vector<64x64xf32> to vector<8x64xf32>
    %58 = arith.select %2, %56, %57 : vector<8x64xi1>, vector<8x64xf32>
    %cst_15 = arith.constant dense<0.000000e+00> : vector<8x64xf32>
    %59 = tpu.matmul %55, %9, %cst_15 {dimension_numbers = #tpu.dot_dimension_numbers<[1], [0], [0], [1], [0, 0, 1, 1], [], []>} : vector<8x64xf32>, vector<64x64xf32>, vector<8x64xf32> -> vector<8x64xf32>
    %60 = arith.addf %58, %59 : vector<8x64xf32>
    %61 = math.tanh %60 : vector<8x64xf32>
    %62 = tpu.concatenate %19, %25, %31, %37, %43, %49, %55, %61 in 0 : vector<8x64xf32>, vector<8x64xf32>, vector<8x64xf32>, vector<8x64xf32>, vector<8x64xf32>, vector<8x64xf32>, vector<8x64xf32>, vector<8x64xf32> -> vector<64x64xf32>
    %63 = tpu.concatenate %61, %55, %49, %43, %37, %31, %25, %19 in 0 : vector<8x64xf32>, vector<8x64xf32>, vector<8x64xf32>, vector<8x64xf32>, vector<8x64xf32>, vector<8x64xf32>, vector<8x64xf32>, vector<8x64xf32> -> vector<64x64xf32>
    %64 = arith.select %5, %62, %63 : vector<64x64xi1>, vector<64x64xf32>
    %c72 = arith.constant 72 : index
    %c0_16 = arith.constant 0 : index
    %65 = vector.load %arg1[%c72, %c0_16] : memref<144x64xf32, #tpu.memory_space<vmem>>, vector<64x64xf32>
    %c136 = arith.constant 136 : index
    %c0_17 = arith.constant 0 : index
    %66 = vector.load %arg1[%c136, %c0_17] : memref<144x64xf32, #tpu.memory_space<vmem>>, vector<1x64xf32>
    %c64_18 = arith.constant 64 : index
    %c0_19 = arith.constant 0 : index
    %67 = vector.load %arg2[%c64_18, %c0_19] : memref<128x64xf32, #tpu.memory_space<vmem>>, vector<64x64xf32>
    %cst_20 = arith.constant dense<0.000000e+00> : vector<64x64xf32>
    %68 = tpu.matmul %64, %65, %cst_20 {dimension_numbers = #tpu.dot_dimension_numbers<[1], [0], [0], [1], [0, 0, 1, 1], [], []>} : vector<64x64xf32>, vector<64x64xf32>, vector<64x64xf32> -> vector<64x64xf32>
    %69 = vector.broadcast %66 : vector<1x64xf32> to vector<64x64xf32>
    %70 = arith.addf %68, %69 : vector<64x64xf32>
    %cst_21 = arith.constant 0.000000e+00 : f32
    %71 = vector.broadcast %cst_21 : f32 to vector<8x64xf32>
    %72 = vector.extract_strided_slice %70 {offsets = [0, 0], sizes = [8, 64], strides = [1, 1]} : vector<64x64xf32> to vector<8x64xf32>
    %73 = vector.extract_strided_slice %70 {offsets = [56, 0], sizes = [8, 64], strides = [1, 1]} : vector<64x64xf32> to vector<8x64xf32>
    %74 = arith.select %2, %72, %73 : vector<8x64xi1>, vector<8x64xf32>
    %cst_22 = arith.constant dense<0.000000e+00> : vector<8x64xf32>
    %75 = tpu.matmul %71, %67, %cst_22 {dimension_numbers = #tpu.dot_dimension_numbers<[1], [0], [0], [1], [0, 0, 1, 1], [], []>} : vector<8x64xf32>, vector<64x64xf32>, vector<8x64xf32> -> vector<8x64xf32>
    %76 = arith.addf %74, %75 : vector<8x64xf32>
    %77 = math.tanh %76 : vector<8x64xf32>
    %78 = vector.extract_strided_slice %70 {offsets = [8, 0], sizes = [8, 64], strides = [1, 1]} : vector<64x64xf32> to vector<8x64xf32>
    %79 = vector.extract_strided_slice %70 {offsets = [48, 0], sizes = [8, 64], strides = [1, 1]} : vector<64x64xf32> to vector<8x64xf32>
    %80 = arith.select %2, %78, %79 : vector<8x64xi1>, vector<8x64xf32>
    %cst_23 = arith.constant dense<0.000000e+00> : vector<8x64xf32>
    %81 = tpu.matmul %77, %67, %cst_23 {dimension_numbers = #tpu.dot_dimension_numbers<[1], [0], [0], [1], [0, 0, 1, 1], [], []>} : vector<8x64xf32>, vector<64x64xf32>, vector<8x64xf32> -> vector<8x64xf32>
    %82 = arith.addf %80, %81 : vector<8x64xf32>
    %83 = math.tanh %82 : vector<8x64xf32>
    %84 = vector.extract_strided_slice %70 {offsets = [16, 0], sizes = [8, 64], strides = [1, 1]} : vector<64x64xf32> to vector<8x64xf32>
    %85 = vector.extract_strided_slice %70 {offsets = [40, 0], sizes = [8, 64], strides = [1, 1]} : vector<64x64xf32> to vector<8x64xf32>
    %86 = arith.select %2, %84, %85 : vector<8x64xi1>, vector<8x64xf32>
    %cst_24 = arith.constant dense<0.000000e+00> : vector<8x64xf32>
    %87 = tpu.matmul %83, %67, %cst_24 {dimension_numbers = #tpu.dot_dimension_numbers<[1], [0], [0], [1], [0, 0, 1, 1], [], []>} : vector<8x64xf32>, vector<64x64xf32>, vector<8x64xf32> -> vector<8x64xf32>
    %88 = arith.addf %86, %87 : vector<8x64xf32>
    %89 = math.tanh %88 : vector<8x64xf32>
    %90 = vector.extract_strided_slice %70 {offsets = [24, 0], sizes = [8, 64], strides = [1, 1]} : vector<64x64xf32> to vector<8x64xf32>
    %91 = vector.extract_strided_slice %70 {offsets = [32, 0], sizes = [8, 64], strides = [1, 1]} : vector<64x64xf32> to vector<8x64xf32>
    %92 = arith.select %2, %90, %91 : vector<8x64xi1>, vector<8x64xf32>
    %cst_25 = arith.constant dense<0.000000e+00> : vector<8x64xf32>
    %93 = tpu.matmul %89, %67, %cst_25 {dimension_numbers = #tpu.dot_dimension_numbers<[1], [0], [0], [1], [0, 0, 1, 1], [], []>} : vector<8x64xf32>, vector<64x64xf32>, vector<8x64xf32> -> vector<8x64xf32>
    %94 = arith.addf %92, %93 : vector<8x64xf32>
    %95 = math.tanh %94 : vector<8x64xf32>
    %96 = vector.extract_strided_slice %70 {offsets = [32, 0], sizes = [8, 64], strides = [1, 1]} : vector<64x64xf32> to vector<8x64xf32>
    %97 = vector.extract_strided_slice %70 {offsets = [24, 0], sizes = [8, 64], strides = [1, 1]} : vector<64x64xf32> to vector<8x64xf32>
    %98 = arith.select %2, %96, %97 : vector<8x64xi1>, vector<8x64xf32>
    %cst_26 = arith.constant dense<0.000000e+00> : vector<8x64xf32>
    %99 = tpu.matmul %95, %67, %cst_26 {dimension_numbers = #tpu.dot_dimension_numbers<[1], [0], [0], [1], [0, 0, 1, 1], [], []>} : vector<8x64xf32>, vector<64x64xf32>, vector<8x64xf32> -> vector<8x64xf32>
    %100 = arith.addf %98, %99 : vector<8x64xf32>
    %101 = math.tanh %100 : vector<8x64xf32>
    %102 = vector.extract_strided_slice %70 {offsets = [40, 0], sizes = [8, 64], strides = [1, 1]} : vector<64x64xf32> to vector<8x64xf32>
    %103 = vector.extract_strided_slice %70 {offsets = [16, 0], sizes = [8, 64], strides = [1, 1]} : vector<64x64xf32> to vector<8x64xf32>
    %104 = arith.select %2, %102, %103 : vector<8x64xi1>, vector<8x64xf32>
    %cst_27 = arith.constant dense<0.000000e+00> : vector<8x64xf32>
    %105 = tpu.matmul %101, %67, %cst_27 {dimension_numbers = #tpu.dot_dimension_numbers<[1], [0], [0], [1], [0, 0, 1, 1], [], []>} : vector<8x64xf32>, vector<64x64xf32>, vector<8x64xf32> -> vector<8x64xf32>
    %106 = arith.addf %104, %105 : vector<8x64xf32>
    %107 = math.tanh %106 : vector<8x64xf32>
    %108 = vector.extract_strided_slice %70 {offsets = [48, 0], sizes = [8, 64], strides = [1, 1]} : vector<64x64xf32> to vector<8x64xf32>
    %109 = vector.extract_strided_slice %70 {offsets = [8, 0], sizes = [8, 64], strides = [1, 1]} : vector<64x64xf32> to vector<8x64xf32>
    %110 = arith.select %2, %108, %109 : vector<8x64xi1>, vector<8x64xf32>
    %cst_28 = arith.constant dense<0.000000e+00> : vector<8x64xf32>
    %111 = tpu.matmul %107, %67, %cst_28 {dimension_numbers = #tpu.dot_dimension_numbers<[1], [0], [0], [1], [0, 0, 1, 1], [], []>} : vector<8x64xf32>, vector<64x64xf32>, vector<8x64xf32> -> vector<8x64xf32>
    %112 = arith.addf %110, %111 : vector<8x64xf32>
    %113 = math.tanh %112 : vector<8x64xf32>
    %114 = vector.extract_strided_slice %70 {offsets = [56, 0], sizes = [8, 64], strides = [1, 1]} : vector<64x64xf32> to vector<8x64xf32>
    %115 = vector.extract_strided_slice %70 {offsets = [0, 0], sizes = [8, 64], strides = [1, 1]} : vector<64x64xf32> to vector<8x64xf32>
    %116 = arith.select %2, %114, %115 : vector<8x64xi1>, vector<8x64xf32>
    %cst_29 = arith.constant dense<0.000000e+00> : vector<8x64xf32>
    %117 = tpu.matmul %113, %67, %cst_29 {dimension_numbers = #tpu.dot_dimension_numbers<[1], [0], [0], [1], [0, 0, 1, 1], [], []>} : vector<8x64xf32>, vector<64x64xf32>, vector<8x64xf32> -> vector<8x64xf32>
    %118 = arith.addf %116, %117 : vector<8x64xf32>
    %119 = math.tanh %118 : vector<8x64xf32>
    %120 = arith.select %2, %119, %77 : vector<8x64xi1>, vector<8x64xf32>
    %c0_30 = arith.constant 0 : index
    %c0_31 = arith.constant 0 : index
    %121 = vector.load %arg3[%c0_30, %c0_31] : memref<65x4xf32, #tpu.memory_space<vmem>>, vector<64x4xf32>
    %c64_32 = arith.constant 64 : index
    %c0_33 = arith.constant 0 : index
    %122 = vector.load %arg3[%c64_32, %c0_33] : memref<65x4xf32, #tpu.memory_space<vmem>>, vector<1x4xf32>
    %cst_34 = arith.constant dense<0.000000e+00> : vector<8x4xf32>
    %123 = tpu.matmul %120, %121, %cst_34 {dimension_numbers = #tpu.dot_dimension_numbers<[1], [0], [0], [1], [0, 0, 1, 1], [], []>} : vector<8x64xf32>, vector<64x4xf32>, vector<8x4xf32> -> vector<8x4xf32>
    %124 = vector.broadcast %122 : vector<1x4xf32> to vector<8x4xf32>
    %125 = arith.addf %123, %124 : vector<8x4xf32>
    %c0_35 = arith.constant 0 : index
    %c0_36 = arith.constant 0 : index
    %126 = vector.load %arg4[%c0_35, %c0_36] : memref<8x4xf32, #tpu.memory_space<vmem>>, vector<8x4xf32>
    tpu.vector_store %arg4[%c0_35, %c0_36], %125 {strides = array<i32>} : memref<8x4xf32, #tpu.memory_space<vmem>>, vector<8x4xf32>,
    return
  }
}

</mosaic_0001>

<bundles_post_ra>
// kernel: rnn_model_forward.1
= control target key start
LH: loop header
LB: loop body
LE: loop exit
PB: predicated region body
PF: predicated region fallthrough
CT: control target
= control target key end

     0   :  { %vm43_vm0 = vcmask 130048   ;;  %v2477_v2 = vmov 0.0|0.0   ;;  %vm2478_vm1 = vmmov 0   ;;  %v2479_v4 = vmov 0.0   ;;  %s2974_s1 = inlined_call_operand.vmem [shape: f32[144,64], index: 1, kind: input, shape index: {}]   ;;  %s2975_s0 = inlined_call_operand.vmem [shape: f32[64,16], index: 0, kind: input, shape index: {}]   ;;  %s2976_s2 = inlined_call_operand.vmem [shape: f32[128,64], index: 2, kind: input, shape index: {}]   ;;  %s2977_s3 = inlined_call_operand.vmem [shape: f32[65,4], index: 3, kind: input, shape index: {}]   ;;  %s2978_s4 = inlined_call_operand.vmem [shape: f32[8,4], index: 4, kind: output, shape index: {}]  }
   0x1   :  { %v28_v0 = vld [vmem:[%s2974_s1] sm:$0xff]  ;;  %v29_v1 = vld [vmem:[%s2974_s1 + $0x8] sm:$0xff]  ;;  %2222 = vmatprep.subr.bf16.mxu1 %v2477_v2  ;;  %1883 = vmatprep.mubr.msk.f32.mxu1 %vm2478_vm1, %v2479_v4  ;;  %v33_v9 = vld [vmem:[%s2976_s2 + $0x10] sm:$0xff]  ;;  %v17_v27 = vlaneseq  ;;  %vm174_vm3 = vcmask 523264   ;;  %vm1632_vm4 = vcmask 31744  }
   0x2   :  { %v20_v3 = vld [vmem:[%s2975_s0] sm:$0xff]  ;;  %v2218_v5 = vpack.c.bf16 %v29_v1, %v28_v0  ;;  %v32_v7 = vld [vmem:[%s2976_s2 + $0x8] sm:$0xff]  ;;  %v34_v10 = vld [vmem:[%s2976_s2 + $0x18] sm:$0xff] }
   0x3   :  { %1855 = vmatprep.mubr.msk.f32.mxu0 %vm43_vm0, %v20_v3  ;;  %v31_v6 = vld [vmem:[%s2976_s2] sm:$0xff]  ;;  %v21_v11 = vld [vmem:[%s2975_s0 + $0x8] sm:$0xff]  ;;  %v2536_v12 = vpack.c.bf16 %v34_v10, %v33_v9  ;;  %v22_v13 = vld [vmem:[%s2975_s0 + $0x10] sm:$0xff]  ;;  %v2611_v31 = vand.u32 127, %v17_v27 }
   0x4   :  { %v2524_v8 = vpack.c.bf16 %v32_v7, %v31_v6  ;;  %2219 = vmatprep.subr.bf16.mxu0 %v2218_v5  ;;  %v35_v14 = vld [vmem:[%s2976_s2 + $0x20] sm:$0xff]  ;;  %v36_v15 = vld [vmem:[%s2976_s2 + $0x28] sm:$0xff]  ;;  %v23_v16 = vld [vmem:[%s2975_s0 + $0x18] sm:$0xff] }
   0x5   :  { %2221 = vmatpush3.bf16.msra.mxu0 %v2218_v5  ;;  %v2555_v17 = vpack.c.bf16 %v36_v15, %v35_v14  ;;  %v24_v18 = vld [vmem:[%s2975_s0 + $0x20] sm:$0xff]  ;;  %v37_v19 = vld [vmem:[%s2976_s2 + $0x30] sm:$0xff]  ;;  %v38_v20 = vld [vmem:[%s2976_s2 + $0x38] sm:$0xff]  ;;  %vm19_vm2 = vcmp.lt.s32.totalorder %v2611_v31, 32 }
   0x6   :  { %2224 = vmatpush3.bf16.msra.mxu1 %v2524_v8  ;;  %2234 = vmatprep.subr.bf16.mxu0 %v2477_v2  ;;  %v25_v21 = vld [vmem:[%s2975_s0 + $0x28] sm:$0xff]  ;;  %v2575_v22 = vpack.c.bf16 %v38_v20, %v37_v19  ;;  %v26_v23 = vld [vmem:[%s2975_s0 + $0x30] sm:$0xff]  ;;  %v27_v24 = vld [vmem:[%s2975_s0 + $0x38] sm:$0xff] }
   0x7   :  { %2225 = vmatprep.subr.bf16.mxu1 %v2477_v2  ;;  %v1638_v25 = vld [vmem:[%s2974_s1 + $0x40] ss:$0 sm:$0xff]  ;;  %v791_v19 = vld [vmem:[%s2974_s1 + $0x50] sm:$0xff] }
   0x8   :  { %1856 = vmatmul.mubr.msk.f32.vlgmr.msra.gmra.mrb[0].mxu0 %vm43_vm0, %v21_v11 }
   0x9   :  { %1858 = vmatprep.mubr.msk.f32.mxu0 %vm43_vm0, %v22_v13  ;;  %2236 = vmatpush3.bf16.msra.mxu0 %v2524_v8 }
   0xa   :  { %2227 = vmatpush3.bf16.msra.mxu1 %v2536_v12  ;;  %2237 = vmatprep.subr.bf16.mxu0 %v2477_v2 }
   0xb   :  { %2228 = vmatprep.subr.bf16.mxu1 %v2477_v2 }
   0xc   :  { %1859 = vmatmul.mubr.msk.f32.gmra.mrb[2].mxu0 %vm43_vm0, %v23_v16 }
   0xd   :  { %1861 = vmatprep.mubr.msk.f32.mxu0 %vm43_vm0, %v24_v18  ;;  %2239 = vmatpush3.bf16.msra.mxu0 %v2536_v12  ;;  %v790_v18 = vld [vmem:[%s2974_s1 + $0x48] sm:$0xff] }
   0xe   :  { %2230 = vmatpush3.bf16.msra.mxu1 %v2555_v17  ;;  %2240 = vmatprep.subr.bf16.mxu0 %v2477_v2  ;;  %v2318_v20 = vpack.c.bf16 %v791_v19, %v790_v18 }
   0xf   :  { %2231 = vmatprep.subr.bf16.mxu1 %v2477_v2 }
  0x10   :  { %1862 = vmatmul.mubr.msk.f32.gmra.mrb[4].mxu0 %vm43_vm0, %v25_v21  ;;  %v792_v21 = vld [vmem:[%s2974_s1 + $0x58] sm:$0xff] }
  0x11   :  { %1864 = vmatprep.mubr.msk.f32.mxu0 %vm43_vm0, %v26_v23  ;;  %2242 = vmatpush3.bf16.msra.mxu0 %v2555_v17 }
  0x12   :  { %2233 = vmatpush3.bf16.msra.mxu1 %v2575_v22  ;;  %2243 = vmatprep.subr.bf16.mxu0 %v2477_v2 }
  0x13   :  { %2246 = vmatprep.subr.bf16.mxu1 %v2477_v2 }
  0x14   :  { %1865 = vmatmul.mubr.msk.f32.gmra.mrb[6].mxu0 %vm43_vm0, %v27_v24  ;;  %v794_v24 = vld [vmem:[%s2974_s1 + $0x68] sm:$0xff] }
  0x15   :  { %1884 = vmatmul.mubr.f32.vlgmr.msra.gmra.mrb[0].mxu1 %v2479_v4  ;;  %1902 = vmatprep.mubr.msk.f32.mxu0 %vm2478_vm1, %v2479_v4 }
  0x16   :  { %2248 = vmatpush3.bf16.msra.mxu1 %v2524_v8  ;;  %2245 = vmatpush3.bf16.msra.mxu0 %v2575_v22 }
  0x17   :  { %2249 = vmatprep.subr.bf16.mxu1 %v2477_v2  ;;  %1921 = vmatprep.mubr.msk.f32.mxu1 %vm2478_vm1, %v2479_v4 }
  0x18   :  { %2258 = vmatprep.subr.bf16.mxu0 %v2477_v2 }
  0x1a   :  { %2251 = vmatpush3.bf16.msra.mxu1 %v2536_v12 }
  0x1b   :  { %2252 = vmatprep.subr.bf16.mxu1 %v2477_v2 }
  0x1e   :  { %2254 = vmatpush3.bf16.msra.mxu1 %v2555_v17 }
  0x1f   :  { %2255 = vmatprep.subr.bf16.mxu1 %v2477_v2 }
  0x22   :  { %2257 = vmatpush3.bf16.msra.mxu1 %v2575_v22 }
  0x23   :  { %2270 = vmatprep.subr.bf16.mxu1 %v2477_v2 }
  0xdb   :  { %v1857_v26 = vpop.f32.mrb[0].mxu0 }
  0xdc   :  { %v140_v28 = vadd.f32 %v1857_v26, %v1638_v25  ;;  %v134_v29 = vpop.f32.mrb[1].mxu0  ;;  %v796_v26 = vld [vmem:[%s2974_s1 + $0x78] sm:$0xff] }
  0xdd   :  { %v135_v45 = vadd.f32 %v1638_v25, %v134_v29 }
  0xdf   :  { %v1860_v30 = vpop.f32.mrb[2].mxu0 }
  0xe0   :  { %v150_v32 = vadd.f32 %v1860_v30, %v1638_v25  ;;  %v144_v33 = vpop.f32.mrb[3].mxu0  ;;  %v799_v30 = vld [vmem:[%s2976_s2 + $0x40] sm:$0xff] }
  0xe1   :  { %v145_v34 = vadd.f32 %v1638_v25, %v144_v33 }
  0xe3   :  { %v1863_v35 = vpop.f32.mrb[4].mxu0 }
  0xe4   :  { %v160_v36 = vadd.f32 %v1863_v35, %v1638_v25  ;;  %v154_v37 = vpop.f32.mrb[5].mxu0  ;;  %v802_v35 = vld [vmem:[%s2976_s2 + $0x58] sm:$0xff] }
  0xe5   :  { %v155_v38 = vadd.f32 %v1638_v25, %v154_v37  ;;  %v803_v37 = vld [vmem:[%s2976_s2 + $0x60] sm:$0xff] }
  0xe6   :  { %v326_v39 = vsel %vm19_vm2, %v145_v34, %v160_v36  ;;  %v2618_v40 = vsel %vm19_vm2, %v160_v36, %v145_v34  ;;  %v801_v34 = vld [vmem:[%s2976_s2 + $0x50] sm:$0xff] }
  0xe7   :  { %v1866_v41 = vpop.f32.mrb[6].mxu0  ;;  %v402_v43 = vsel %vm19_vm2, %v150_v32, %v155_v38  ;;  %v2624_v44 = vsel %vm19_vm2, %v155_v38, %v150_v32  ;;  %v800_v32 = vld [vmem:[%s2976_s2 + $0x48] sm:$0xff]  ;;  %v2761_v36 = vpack.c.bf16 %v802_v35, %v801_v34 }
  0xe8   :  { %v244_v42 = vpop.f32.mrb[0].mxu1  ;;  %v170_v46 = vadd.f32 %v1866_v41, %v1638_v25  ;;  %v164_v47 = vpop.f32.mrb[7].mxu0  ;;  %v2750_v33 = vpack.c.bf16 %v800_v32, %v799_v30  ;;  %v804_v38 = vld [vmem:[%s2976_s2 + $0x68] sm:$0xff]  ;;  %v806_v41 = vld [vmem:[%s2976_s2 + $0x78] sm:$0xff] }
  0xe9   :  { %v1885_v48 = vpop.f32.mrb[1].mxu1  ;;  %v165_v49 = vadd.f32 %v1638_v25, %v164_v47  ;;  %v795_v25 = vld [vmem:[%s2974_s1 + $0x70] sm:$0xff] }
  0xea   :  { %v173_v50 = vsel %vm19_vm2, %v135_v45, %v170_v46  ;;  %v2630_v51 = vsel %vm19_vm2, %v170_v46, %v135_v45  ;;  %v2326_v27 = vpack.c.bf16 %v795_v25, %v794_v24 }
  0xeb   :  { %v248_v52 = vadd.f32 %v244_v42, %v173_v50  ;;  %v250_v53 = vsel %vm19_vm2, %v140_v28, %v165_v49  ;;  %v2636_v54 = vsel %vm19_vm2, %v165_v49, %v140_v28  ;;  %v797_v28 = vld [vmem:[%s2974_s1 + $0x80] sm:$0xff] }
  0xec   :  { %v2330_v29 = vpack.c.bf16 %v797_v28, %v796_v26 }
  0xed   :  { %2445 = vtanh.f32 %v248_v52 }
  0xf7   :  { %v2638_v55 = vpop.eup %2445 }
  0xf8   :  { %1903 = vmatmul.mubr.msk.f32.vlgmr.msra.gmra.mrb[8].mxu0 %vm174_vm3, %v2638_v55 }
  0xf9   :  { %2260 = vmatpush3.bf16.msra.mxu0 %v2524_v8  ;;  %1940 = vmatprep.mubr.msk.f32.mxu0 %vm2478_vm1, %v2479_v4 }
  0xfa   :  { %2261 = vmatprep.subr.bf16.mxu0 %v2477_v2 }
  0xfd   :  { %2263 = vmatpush3.bf16.msra.mxu0 %v2536_v12 }
  0xfe   :  { %2264 = vmatprep.subr.bf16.mxu0 %v2477_v2 }
 0x101   :  { %2266 = vmatpush3.bf16.msra.mxu0 %v2555_v17 }
 0x102   :  { %2267 = vmatprep.subr.bf16.mxu0 %v2477_v2 }
 0x105   :  { %2269 = vmatpush3.bf16.msra.mxu0 %v2575_v22 }
 0x106   :  { %2282 = vmatprep.subr.bf16.mxu0 %v2477_v2 }
 0x1cb   :  { %v320_v56 = vpop.f32.mrb[8].mxu0 }
 0x1cc   :  { %v324_v57 = vadd.f32 %v320_v56, %v250_v53  ;;  %v1904_v58 = vpop.f32.mrb[9].mxu0 }
 0x1cd   :  { %v1654_v58 = vld [vmem:[%s2974_s1 + $0x88] ss:$0 sm:$0xff] }
 0x1ce   :  { %2447 = vtanh.f32 %v324_v57 }
 0x1d8   :  { %v2652_v59 = vpop.eup %2447 }
 0x1d9   :  { %1922 = vmatmul.mubr.msk.f32.vlgmr.msra.gmra.mrb[2].mxu1 %vm174_vm3, %v2652_v59 }
 0x1da   :  { %2272 = vmatpush3.bf16.msra.mxu1 %v2524_v8  ;;  %1959 = vmatprep.mubr.msk.f32.mxu1 %vm2478_vm1, %v2479_v4 }
 0x1db   :  { %2273 = vmatprep.subr.bf16.mxu1 %v2477_v2 }
 0x1de   :  { %2275 = vmatpush3.bf16.msra.mxu1 %v2536_v12 }
 0x1df   :  { %2276 = vmatprep.subr.bf16.mxu1 %v2477_v2 }
 0x1e2   :  { %2278 = vmatpush3.bf16.msra.mxu1 %v2555_v17 }
 0x1e3   :  { %2279 = vmatprep.subr.bf16.mxu1 %v2477_v2 }
 0x1e6   :  { %2281 = vmatpush3.bf16.msra.mxu1 %v2575_v22 }
 0x1e7   :  { %2294 = vmatprep.subr.bf16.mxu1 %v2477_v2 }
 0x2ac   :  { %v396_v60 = vpop.f32.mrb[2].mxu1 }
 0x2ad   :  { %v400_v61 = vadd.f32 %v396_v60, %v326_v39  ;;  %v1923_v62 = vpop.f32.mrb[3].mxu1  ;;  %v2771_v39 = vpack.c.bf16 %v804_v38, %v803_v37 }
 0x2af   :  { %2449 = vtanh.f32 %v400_v61 }
 0x2b9   :  { %v2666_v63 = vpop.eup %2449 }
 0x2ba   :  { %1941 = vmatmul.mubr.msk.f32.vlgmr.msra.gmra.mrb[10].mxu0 %vm174_vm3, %v2666_v63 }
 0x2bb   :  { %2284 = vmatpush3.bf16.msra.mxu0 %v2524_v8  ;;  %1978 = vmatprep.mubr.msk.f32.mxu0 %vm2478_vm1, %v2479_v4 }
 0x2bc   :  { %2285 = vmatprep.subr.bf16.mxu0 %v2477_v2 }
 0x2bf   :  { %2287 = vmatpush3.bf16.msra.mxu0 %v2536_v12 }
 0x2c0   :  { %2288 = vmatprep.subr.bf16.mxu0 %v2477_v2 }
 0x2c3   :  { %2290 = vmatpush3.bf16.msra.mxu0 %v2555_v17 }
 0x2c4   :  { %2291 = vmatprep.subr.bf16.mxu0 %v2477_v2 }
 0x2c7   :  { %2293 = vmatpush3.bf16.msra.mxu0 %v2575_v22 }
 0x2c8   :  { %2306 = vmatprep.subr.bf16.mxu0 %v2477_v2 }
 0x38d   :  { %v472_v0 = vpop.f32.mrb[10].mxu0 }
 0x38e   :  { %v476_v1 = vadd.f32 %v472_v0, %v402_v43  ;;  %v1942_v3 = vpop.f32.mrb[11].mxu0 }
 0x390   :  { %2451 = vtanh.f32 %v476_v1 }
 0x39a   :  { %v2680_v5 = vpop.eup %2451 }
 0x39b   :  { %1960 = vmatmul.mubr.msk.f32.vlgmr.msra.gmra.mrb[4].mxu1 %vm174_vm3, %v2680_v5 }
 0x39c   :  { %2296 = vmatpush3.bf16.msra.mxu1 %v2524_v8  ;;  %1997 = vmatprep.mubr.msk.f32.mxu1 %vm2478_vm1, %v2479_v4 }
 0x39d   :  { %2297 = vmatprep.subr.bf16.mxu1 %v2477_v2 }
 0x3a0   :  { %2299 = vmatpush3.bf16.msra.mxu1 %v2536_v12 }
 0x3a1   :  { %2300 = vmatprep.subr.bf16.mxu1 %v2477_v2 }
 0x3a4   :  { %2302 = vmatpush3.bf16.msra.mxu1 %v2555_v17 }
 0x3a5   :  { %2303 = vmatprep.subr.bf16.mxu1 %v2477_v2 }
 0x3a8   :  { %2305 = vmatpush3.bf16.msra.mxu1 %v2575_v22 }
 0x3a9   :  { %2319 = vmatprep.subr.bf16.mxu1 %v2318_v20 }
 0x46e   :  { %v548_v6 = vpop.f32.mrb[4].mxu1 }
 0x46f   :  { %v552_v7 = vadd.f32 %v548_v6, %v2624_v44  ;;  %v1961_v9 = vpop.f32.mrb[5].mxu1 }
 0x471   :  { %2453 = vtanh.f32 %v552_v7 }
 0x47b   :  { %v2694_v10 = vpop.eup %2453 }
 0x47c   :  { %1979 = vmatmul.mubr.msk.f32.vlgmr.msra.gmra.mrb[12].mxu0 %vm174_vm3, %v2694_v10  ;;  %v785_v50 = vsel %vm19_vm2, %v2680_v5, %v2694_v10 }
 0x47d   :  { %2308 = vmatpush3.bf16.msra.mxu0 %v2524_v8  ;;  %2016 = vmatprep.mubr.msk.f32.mxu0 %vm2478_vm1, %v2479_v4 }
 0x47e   :  { %2309 = vmatprep.subr.bf16.mxu0 %v2477_v2 }
 0x481   :  { %2311 = vmatpush3.bf16.msra.mxu0 %v2536_v12 }
 0x482   :  { %2312 = vmatprep.subr.bf16.mxu0 %v2477_v2 }
 0x485   :  { %2314 = vmatpush3.bf16.msra.mxu0 %v2555_v17 }
 0x486   :  { %2315 = vmatprep.subr.bf16.mxu0 %v2477_v2 }
 0x489   :  { %2317 = vmatpush3.bf16.msra.mxu0 %v2575_v22  ;;  %v793_v22 = vld [vmem:[%s2974_s1 + $0x60] sm:$0xff] }
 0x48a   :  { %2334 = vmatprep.subr.bf16.mxu0 %v2477_v2  ;;  %v2322_v23 = vpack.c.bf16 %v793_v22, %v792_v21 }
 0x54f   :  { %v624_v11 = vpop.f32.mrb[12].mxu0 }
 0x550   :  { %v628_v8 = vadd.f32 %v624_v11, %v2618_v40  ;;  %v1980_v13 = vpop.f32.mrb[13].mxu0  ;;  %v805_v40 = vld [vmem:[%s2976_s2 + $0x70] sm:$0xff] }
 0x551   :  { %v2781_v42 = vpack.c.bf16 %v806_v41, %v805_v40 }
 0x552   :  { %2455 = vtanh.f32 %v628_v8 }
 0x55c   :  { %v2709_v14 = vpop.eup %2455 }
 0x55d   :  { %1998 = vmatmul.mubr.msk.f32.vlgmr.msra.gmra.mrb[6].mxu1 %vm174_vm3, %v2709_v14  ;;  %v784_v49 = vsel %vm19_vm2, %v2666_v63, %v2709_v14  ;;  %v787_v52 = vsel %vm19_vm2, %v2709_v14, %v2666_v63 }
 0x55e   :  { %2321 = vmatpush3.bf16.msra.mxu1 %v2318_v20 }
 0x55f   :  { %2323 = vmatprep.subr.bf16.mxu1 %v2322_v23 }
 0x562   :  { %2325 = vmatpush3.bf16.msra.mxu1 %v2322_v23 }
 0x563   :  { %2327 = vmatprep.subr.bf16.mxu1 %v2326_v27 }
 0x566   :  { %2329 = vmatpush3.bf16.msra.mxu1 %v2326_v27 }
 0x567   :  { %2331 = vmatprep.subr.bf16.mxu1 %v2330_v29 }
 0x56a   :  { %2333 = vmatpush3.bf16.msra.mxu1 %v2330_v29 }
 0x56b   :  { %2346 = vmatprep.subr.bf16.mxu1 %v2477_v2 }
 0x630   :  { %v700_v12 = vpop.f32.mrb[6].mxu1 }
 0x631   :  { %v704_v15 = vadd.f32 %v700_v12, %v2636_v54  ;;  %v1999_v16 = vpop.f32.mrb[7].mxu1 }
 0x633   :  { %2457 = vtanh.f32 %v704_v15 }
 0x63d   :  { %v2714_v17 = vpop.eup %2457 }
 0x63e   :  { %2017 = vmatmul.mubr.msk.f32.vlgmr.msra.gmra.mrb[14].mxu0 %vm174_vm3, %v2714_v17  ;;  %v783_v48 = vsel %vm19_vm2, %v2652_v59, %v2714_v17  ;;  %v788_v53 = vsel %vm19_vm2, %v2714_v17, %v2652_v59 }
 0x63f   :  { %2063 = vmatprep.mubr.msk.f32.mxu0 %vm2478_vm1, %v2479_v4  ;;  %2336 = vmatpush3.bf16.msra.mxu0 %v2750_v33 }
 0x640   :  { %2337 = vmatprep.subr.bf16.mxu0 %v2477_v2 }
 0x643   :  { %2339 = vmatpush3.bf16.msra.mxu0 %v2761_v36 }
 0x644   :  { %2340 = vmatprep.subr.bf16.mxu0 %v2477_v2 }
 0x647   :  { %2342 = vmatpush3.bf16.msra.mxu0 %v2771_v39 }
 0x648   :  { %2343 = vmatprep.subr.bf16.mxu0 %v2477_v2 }
 0x64b   :  { %2345 = vmatpush3.bf16.msra.mxu0 %v2781_v42 }
 0x64c   :  { %2358 = vmatprep.subr.bf16.mxu0 %v2477_v2 }
 0x64e   :  { %2064 = vmatmul.mubr.f32.vlgmr.msra.gmra.mrb[16].mxu0 %v2479_v4 }
 0x64f   :  { %2360 = vmatpush3.bf16.msra.mxu0 %v2750_v33  ;;  %2101 = vmatprep.mubr.msk.f32.mxu0 %vm2478_vm1, %v2479_v4 }
 0x650   :  { %2361 = vmatprep.subr.bf16.mxu0 %v2477_v2 }
 0x653   :  { %2363 = vmatpush3.bf16.msra.mxu0 %v2761_v36 }
 0x654   :  { %2364 = vmatprep.subr.bf16.mxu0 %v2477_v2 }
 0x657   :  { %2366 = vmatpush3.bf16.msra.mxu0 %v2771_v39 }
 0x658   :  { %2367 = vmatprep.subr.bf16.mxu0 %v2477_v2 }
 0x65b   :  { %2369 = vmatpush3.bf16.msra.mxu0 %v2781_v42 }
 0x65c   :  { %2382 = vmatprep.subr.bf16.mxu0 %v2477_v2 }
 0x711   :  { %v776_v43 = vpop.f32.mrb[14].mxu0 }
 0x712   :  { %v780_v44 = vadd.f32 %v776_v43, %v2630_v51  ;;  %v2018_v45 = vpop.f32.mrb[15].mxu0  ;;  %v786_v51 = vsel %vm19_vm2, %v2694_v10, %v2680_v5 }
 0x714   :  { %2459 = vtanh.f32 %v780_v44 }
 0x71e   :  { %v2460_v46 = vpop.eup %2459 }
 0x71f   :  { %v782_v47 = vsel %vm19_vm2, %v2638_v55, %v2460_v46  ;;  %v789_v54 = vsel %vm19_vm2, %v2460_v46, %v2638_v55 }
 0x720   :  { %2035 = vmatprep.mubr.msk.f32.mxu1 %vm174_vm3, %v782_v47 }
 0x721   :  { %2036 = vmatmul.mubr.msk.f32.vlgmr.msra.gmra.mrb[8].mxu1 %vm174_vm3, %v783_v48  ;;  %v1007_v56 = vpop.f32.mrb[16].mxu0  ;;  %v1547_v48 = vld [vmem:[%s2977_s3 + $0x8] sm:$0xff] }
 0x722   :  { %2038 = vmatprep.mubr.msk.f32.mxu1 %vm174_vm3, %v784_v49  ;;  %2348 = vmatpush3.bf16.msra.mxu1 %v2750_v33  ;;  %v2065_v57 = vpop.f32.mrb[17].mxu0 }
 0x723   :  { %2349 = vmatprep.subr.bf16.mxu1 %v2477_v2  ;;  %v1553_v57 = vld [vmem:[%s2977_s3 + $0x38] sm:$0xff] }
 0x725   :  { %2039 = vmatmul.mubr.msk.f32.gmra.mrb[10].mxu1 %vm174_vm3, %v785_v50  ;;  %v1549_v50 = vld [vmem:[%s2977_s3 + $0x18] sm:$0xff] }
 0x726   :  { %2041 = vmatprep.mubr.msk.f32.mxu1 %vm174_vm3, %v786_v51  ;;  %2351 = vmatpush3.bf16.msra.mxu1 %v2761_v36 }
 0x727   :  { %2352 = vmatprep.subr.bf16.mxu1 %v2477_v2 }
 0x729   :  { %2042 = vmatmul.mubr.msk.f32.gmra.mrb[12].mxu1 %vm174_vm3, %v787_v52  ;;  %v1550_v52 = vld [vmem:[%s2977_s3 + $0x20] sm:$0xff] }
 0x72a   :  { %2044 = vmatprep.mubr.msk.f32.mxu1 %vm174_vm3, %v788_v53  ;;  %2354 = vmatpush3.bf16.msra.mxu1 %v2771_v39  ;;  %v1551_v53 = vld [vmem:[%s2977_s3 + $0x28] sm:$0xff] }
 0x72b   :  { %2355 = vmatprep.subr.bf16.mxu1 %v2477_v2 }
 0x72d   :  { %2045 = vmatmul.mubr.msk.f32.gmra.mrb[14].mxu1 %vm174_vm3, %v789_v54  ;;  %v2437_v54 = vpack.c.bf16 %v1551_v53, %v1550_v52 }
 0x72e   :  { %2357 = vmatpush3.bf16.msra.mxu1 %v2781_v42  ;;  %2082 = vmatprep.mubr.msk.f32.mxu1 %vm2478_vm1, %v2479_v4 }
 0x72f   :  { %2370 = vmatprep.subr.bf16.mxu1 %v2477_v2 }
 0x7f4   :  { %v2037_v59 = vpop.f32.mrb[8].mxu1 }
 0x7f5   :  { %v907_v60 = vadd.f32 %v2037_v59, %v1654_v58  ;;  %v901_v61 = vpop.f32.mrb[9].mxu1 }
 0x7f6   :  { %v902_v13 = vadd.f32 %v1654_v58, %v901_v61 }
 0x7f8   :  { %v2040_v62 = vpop.f32.mrb[10].mxu1 }
 0x7f9   :  { %v917_v55 = vadd.f32 %v2040_v62, %v1654_v58  ;;  %v911_v63 = vpop.f32.mrb[11].mxu1 }
 0x7fa   :  { %v912_v0 = vadd.f32 %v1654_v58, %v911_v63  ;;  %v1670_v63 = vld [vmem:[%s2977_s3 + $0x40] ss:$0 sm:$0xff] }
 0x7fc   :  { %v2043_v1 = vpop.f32.mrb[12].mxu1 }
 0x7fd   :  { %v927_v3 = vadd.f32 %v2043_v1, %v1654_v58  ;;  %v921_v5 = vpop.f32.mrb[13].mxu1 }
 0x7fe   :  { %v922_v6 = vadd.f32 %v1654_v58, %v921_v5 }
 0x7ff   :  { %v1089_v7 = vsel %vm19_vm2, %v912_v0, %v927_v3  ;;  %v2852_v9 = vsel %vm19_vm2, %v927_v3, %v912_v0 }
 0x800   :  { %v2046_v10 = vpop.f32.mrb[14].mxu1  ;;  %v1165_v11 = vsel %vm19_vm2, %v917_v55, %v922_v6  ;;  %v2858_v8 = vsel %vm19_vm2, %v922_v6, %v917_v55 }
 0x801   :  { %v937_v14 = vadd.f32 %v2046_v10, %v1654_v58  ;;  %v931_v12 = vpop.f32.mrb[15].mxu1 }
 0x802   :  { %v932_v15 = vadd.f32 %v1654_v58, %v931_v12 }
 0x803   :  { %v940_v16 = vsel %vm19_vm2, %v902_v13, %v937_v14  ;;  %v2864_v17 = vsel %vm19_vm2, %v937_v14, %v902_v13 }
 0x804   :  { %v1011_v18 = vadd.f32 %v1007_v56, %v940_v16  ;;  %v1013_v19 = vsel %vm19_vm2, %v907_v60, %v932_v15  ;;  %v2870_v20 = vsel %vm19_vm2, %v932_v15, %v907_v60  ;;  %v1552_v56 = vld [vmem:[%s2977_s3 + $0x30] sm:$0xff] }
 0x805   :  { %v2440_v58 = vpack.c.bf16 %v1553_v57, %v1552_v56 }
 0x806   :  { %2461 = vtanh.f32 %v1011_v18 }
 0x810   :  { %v2872_v21 = vpop.eup %2461 }
 0x811   :  { %2083 = vmatmul.mubr.msk.f32.vlgmr.msra.gmra.mrb[16].mxu1 %vm174_vm3, %v2872_v21 }
 0x812   :  { %2372 = vmatpush3.bf16.msra.mxu1 %v2750_v33  ;;  %2120 = vmatprep.mubr.msk.f32.mxu1 %vm2478_vm1, %v2479_v4 }
 0x813   :  { %2373 = vmatprep.subr.bf16.mxu1 %v2477_v2 }
 0x816   :  { %2375 = vmatpush3.bf16.msra.mxu1 %v2761_v36 }
 0x817   :  { %2376 = vmatprep.subr.bf16.mxu1 %v2477_v2 }
 0x81a   :  { %2378 = vmatpush3.bf16.msra.mxu1 %v2771_v39 }
 0x81b   :  { %2379 = vmatprep.subr.bf16.mxu1 %v2477_v2 }
 0x81e   :  { %2381 = vmatpush3.bf16.msra.mxu1 %v2781_v42 }
 0x81f   :  { %2394 = vmatprep.subr.bf16.mxu1 %v2477_v2 }
 0x8e4   :  { %v1083_v22 = vpop.f32.mrb[16].mxu1 }
 0x8e5   :  { %v1087_v23 = vadd.f32 %v1083_v22, %v1013_v19  ;;  %v2084_v24 = vpop.f32.mrb[17].mxu1 }
 0x8e7   :  { %2463 = vtanh.f32 %v1087_v23 }
 0x8f1   :  { %v2464_v25 = vpop.eup %2463 }
 0x8f2   :  { %2102 = vmatmul.mubr.msk.f32.vlgmr.msra.gmra.mrb[18].mxu0 %vm174_vm3, %v2464_v25 }
 0x8f3   :  { %2384 = vmatpush3.bf16.msra.mxu0 %v2750_v33  ;;  %2139 = vmatprep.mubr.msk.f32.mxu0 %vm2478_vm1, %v2479_v4 }
 0x8f4   :  { %2385 = vmatprep.subr.bf16.mxu0 %v2477_v2 }
 0x8f7   :  { %2387 = vmatpush3.bf16.msra.mxu0 %v2761_v36 }
 0x8f8   :  { %2388 = vmatprep.subr.bf16.mxu0 %v2477_v2 }
 0x8fb   :  { %2390 = vmatpush3.bf16.msra.mxu0 %v2771_v39 }
 0x8fc   :  { %2391 = vmatprep.subr.bf16.mxu0 %v2477_v2 }
 0x8ff   :  { %2393 = vmatpush3.bf16.msra.mxu0 %v2781_v42 }
 0x900   :  { %2406 = vmatprep.subr.bf16.mxu0 %v2477_v2 }
 0x9c5   :  { %v1159_v26 = vpop.f32.mrb[18].mxu0 }
 0x9c6   :  { %v1163_v27 = vadd.f32 %v1159_v26, %v1089_v7  ;;  %v2103_v28 = vpop.f32.mrb[19].mxu0 }
 0x9c8   :  { %2465 = vtanh.f32 %v1163_v27 }
 0x9d2   :  { %v2466_v29 = vpop.eup %2465 }
 0x9d3   :  { %2121 = vmatmul.mubr.msk.f32.vlgmr.msra.gmra.mrb[18].mxu1 %vm174_vm3, %v2466_v29 }
 0x9d4   :  { %2396 = vmatpush3.bf16.msra.mxu1 %v2750_v33  ;;  %2158 = vmatprep.mubr.msk.f32.mxu1 %vm2478_vm1, %v2479_v4 }
 0x9d5   :  { %2397 = vmatprep.subr.bf16.mxu1 %v2477_v2 }
 0x9d8   :  { %2399 = vmatpush3.bf16.msra.mxu1 %v2761_v36 }
 0x9d9   :  { %2400 = vmatprep.subr.bf16.mxu1 %v2477_v2 }
 0x9dc   :  { %2402 = vmatpush3.bf16.msra.mxu1 %v2771_v39 }
 0x9dd   :  { %2403 = vmatprep.subr.bf16.mxu1 %v2477_v2 }
 0x9e0   :  { %2405 = vmatpush3.bf16.msra.mxu1 %v2781_v42 }
 0x9e1   :  { %2418 = vmatprep.subr.bf16.mxu1 %v2477_v2 }
 0xaa6   :  { %v1235_v30 = vpop.f32.mrb[18].mxu1 }
 0xaa7   :  { %v1239_v32 = vadd.f32 %v1235_v30, %v1165_v11  ;;  %v2122_v34 = vpop.f32.mrb[19].mxu1 }
 0xaa9   :  { %2467 = vtanh.f32 %v1239_v32 }
 0xab3   :  { %v2468_v35 = vpop.eup %2467 }
 0xab4   :  { %2140 = vmatmul.mubr.msk.f32.vlgmr.msra.gmra.mrb[20].mxu0 %vm174_vm3, %v2468_v35 }
 0xab5   :  { %2408 = vmatpush3.bf16.msra.mxu0 %v2750_v33  ;;  %2177 = vmatprep.mubr.msk.f32.mxu0 %vm2478_vm1, %v2479_v4 }
 0xab6   :  { %2409 = vmatprep.subr.bf16.mxu0 %v2477_v2 }
 0xab9   :  { %2411 = vmatpush3.bf16.msra.mxu0 %v2761_v36 }
 0xaba   :  { %2412 = vmatprep.subr.bf16.mxu0 %v2477_v2 }
 0xabd   :  { %2414 = vmatpush3.bf16.msra.mxu0 %v2771_v39 }
 0xabe   :  { %2415 = vmatprep.subr.bf16.mxu0 %v2477_v2 }
 0xac1   :  { %2417 = vmatpush3.bf16.msra.mxu0 %v2781_v42 }
 0xac2   :  { %2430 = vmatprep.subr.bf16.mxu0 %v2477_v2 }
 0xb87   :  { %v1311_v37 = vpop.f32.mrb[20].mxu0 }
 0xb88   :  { %v1315_v38 = vadd.f32 %v1311_v37, %v2858_v8  ;;  %v2141_v40 = vpop.f32.mrb[21].mxu0 }
 0xb8a   :  { %2469 = vtanh.f32 %v1315_v38 }
 0xb94   :  { %v2470_v41 = vpop.eup %2469 }
 0xb95   :  { %2159 = vmatmul.mubr.msk.f32.vlgmr.msra.gmra.mrb[20].mxu1 %vm174_vm3, %v2470_v41 }
 0xb96   :  { %2420 = vmatpush3.bf16.msra.mxu1 %v2750_v33  ;;  %2196 = vmatprep.mubr.msk.f32.mxu1 %vm2478_vm1, %v2479_v4 }
 0xb97   :  { %2421 = vmatprep.subr.bf16.mxu1 %v2477_v2 }
 0xb9a   :  { %2423 = vmatpush3.bf16.msra.mxu1 %v2761_v36 }
 0xb9b   :  { %2424 = vmatprep.subr.bf16.mxu1 %v2477_v2 }
 0xb9e   :  { %2426 = vmatpush3.bf16.msra.mxu1 %v2771_v39 }
 0xb9f   :  { %2427 = vmatprep.subr.bf16.mxu1 %v2477_v2 }
 0xba2   :  { %2429 = vmatpush3.bf16.msra.mxu1 %v2781_v42  ;;  %v1546_v42 = vld [vmem:[%s2977_s3] sm:$0xff] }
 0xba3   :  { %v2431_v49 = vpack.c.bf16 %v1547_v48, %v1546_v42 }
 0xc68   :  { %v1387_v43 = vpop.f32.mrb[20].mxu1 }
 0xc69   :  { %v1391_v44 = vadd.f32 %v1387_v43, %v2852_v9  ;;  %v2160_v45 = vpop.f32.mrb[21].mxu1 }
 0xc6b   :  { %2471 = vtanh.f32 %v1391_v44 }
 0xc75   :  { %v2472_v33 = vpop.eup %2471 }
 0xc76   :  { %2178 = vmatmul.mubr.msk.f32.vlgmr.msra.gmra.mrb[22].mxu0 %vm174_vm3, %v2472_v33 }
 0xc77   :  { %2215 = vmatprep.mubr.msk.f32.mxu0 %vm2478_vm1, %v2479_v4  ;;  %2432 = vmatpush3.bf16.msra.mxu0 %v2431_v49  ;;  %v1548_v4 = vld [vmem:[%s2977_s3 + $0x10] sm:$0xff] }
 0xc78   :  { %2433 = vmatprep.subr.bf16.mxu0 %v2477_v2  ;;  %v2434_v51 = vpack.c.bf16 %v1549_v50, %v1548_v4 }
 0xc7b   :  { %2435 = vmatpush3.bf16.msra.mxu0 %v2434_v51 }
 0xc7c   :  { %2436 = vmatprep.subr.bf16.mxu0 %v2477_v2 }
 0xc7f   :  { %2438 = vmatpush3.bf16.msra.mxu0 %v2437_v54 }
 0xc80   :  { %2439 = vmatprep.subr.bf16.mxu0 %v2477_v2 }
 0xc83   :  { %2441 = vmatpush3.bf16.msra.mxu0 %v2440_v58 }
 0xd49   :  { %v1463_v36 = vpop.f32.mrb[22].mxu0 }
 0xd4a   :  { %v1467_v46 = vadd.f32 %v1463_v36, %v2870_v20  ;;  %v2179_v47 = vpop.f32.mrb[23].mxu0 }
 0xd4c   :  { %2473 = vtanh.f32 %v1467_v46 }
 0xd56   :  { %v2474_v39 = vpop.eup %2473 }
 0xd57   :  { %2197 = vmatmul.mubr.msk.f32.vlgmr.msra.gmra.mrb[22].mxu1 %vm174_vm3, %v2474_v39 }
 0xe2a   :  { %v1539_v59 = vpop.f32.mrb[22].mxu1 }
 0xe2b   :  { %v1543_v60 = vadd.f32 %v1539_v59, %v2864_v17  ;;  %v2198_v61 = vpop.f32.mrb[23].mxu1 }
 0xe2d   :  { %2475 = vtanh.f32 %v1543_v60 }
 0xe37   :  { %v2476_v62 = vpop.eup %2475 }
 0xe38   :  { %v1545_v55 = vsel %vm19_vm2, %v2476_v62, %v2872_v21 }
 0xe39   :  { %2216 = vmatmul.mubr.msk.f32.vlgmr.msra.gmra.mrb[24].mxu0 %vm174_vm3, %v1545_v55 }
 0xf0c   :  { %v1628_v0 = vpop.f32.mrb[24].mxu0 }
 0xf0d   :  { %v1629_v2 = vadd.f32 %v1670_v63, %v1628_v0  ;;  %v2217_v1 = vpop.f32.mrb[25].mxu0 }
 0xf0f   :  { %1633 = vst.msk [vmem:[%s2978_s4] sm:$0xff] %vm1632_vm4, %v1629_v2 }

</bundles_post_ra>
